<compile_context>
chip_gen: v7x
topology: tpu7x:2x2x1
jax: 0.10.0
libtpu: 0.0.40
codegen_flags: <defaults>
</compile_context>

<pallas_src>
import math
import functools

import jax
import jax.numpy as jnp
import numpy as np
from jax import lax
from jax.experimental import pallas as pl
from jax.experimental.pallas import tpu as pltpu


def _ranpac_kernel(x_ref, w_ref, scale_ref, o_ref, acc_ref, *,
                   inv_num_projection: float, negative_slope: float,
                   non_linearities: str, hoist_scale: bool):
    # x_ref:     (tb, K)        VMEM
    # w_ref:     (1, td, K)     VMEM  (one projection's (td, K) weight rows,
    #                                  native nn.Linear row-major layout)
    # scale_ref: (1,)           SMEM
    # o_ref:     (tb, td)       VMEM
    # acc_ref:   (tb, td) f32   VMEM scratch accumulator
    p = pl.program_id(2)

    @pl.when(p == 0)
    def _init():
        acc_ref[...] = jnp.zeros_like(acc_ref)

    # (tb, K) . (td, K)^T -> (tb, td): contract K against K directly on the
    # transposed operand -- the weight is never transposed host-side.
    y = lax.dot_general(
        x_ref[...], w_ref[0],
        dimension_numbers=(((1,), (1,)), ((), ())),
        preferred_element_type=jnp.float32)

    if not hoist_scale:
        # Non-homogeneous activation (or possibly-negative lambda): scale must
        # be applied before the non-linearity.
        y = y * scale_ref[0]

    if non_linearities == 'leaky_relu':
        if 0.0 <= negative_slope <= 1.0:
            y = jnp.maximum(y, negative_slope * y)   # 1 mul + 1 max on the VPU
        else:
            y = jnp.where(y >= 0, y, negative_slope * y)
    elif non_linearities == 'sigmoid':
        y = jax.nn.sigmoid(y)
    elif non_linearities == 'tanh':
        y = jnp.tanh(y)
    elif non_linearities == 'exp':
        y = jnp.exp(y)
    else:
        raise ValueError(f"unsupported non_linearities: {non_linearities}")

    # Mean over projections == sum over the P grid axis (scaled at finalize).
    acc_ref[...] += y

    @pl.when(p == pl.num_programs(2) - 1)
    def _finalize():
        if hoist_scale:
            # scale_ref[0] == lambda*sqrt(K)/num_projection  (lambda >= 0, so
            # leaky_relu(s*z) == s*leaky_relu(z) and the mean factor folds in).
            o_ref[...] = (acc_ref[...] * scale_ref[0]).astype(o_ref.dtype)
        else:
            o_ref[...] = (acc_ref[...] * inv_num_projection).astype(o_ref.dtype)


def _pick_tile_d(d: int, k: int, target_bytes: int) -> int:
    """Output-dim tile: full D if the per-projection weight block fits the
    budget, otherwise the largest lane-aligned (multiple of 128) divisor of D
    whose (td, K) f32 block fits; falls back to the smallest such divisor."""
    if d * k * 4 <= target_bytes or d % 128 != 0:
        return d
    cands = [td for td in range(128, d, 128) if d % td == 0]
    fitting = [td for td in cands if td * k * 4 <= target_bytes]
    if fitting:
        return max(fitting)
    return min(cands) if cands else d


def ranpac_forward(x, weight, lambda_param, *,
                   num_projection: int, output_dim: int,
                   non_linearities: str = 'leaky_relu',
                   negative_slope: float = 0.2, clamp: bool = True,
                   batch_tile: int = 256,
                   weight_tile_bytes: int = 8 * 1024 * 1024):
    """x: (B, K) f32; weight: (num_projection*output_dim, K) f32 (native layout)."""
    B, K = x.shape
    D = output_dim
    P = num_projection
    PD = P * D
    assert weight.shape == (PD, K)

    lam = jnp.asarray(lambda_param, jnp.float32)
    if clamp:
        lam = jnp.clip(lam, 0.0005, 0.5)
    scale = lam * jnp.float32(math.sqrt(K))

    # Hoist the scale past the activation only when it is guaranteed >= 0
    # (clamp=True, or a statically non-negative Python lambda) and the
    # activation is positively homogeneous (leaky_relu).
    static_nonneg = isinstance(lambda_param, (int, float)) and lambda_param >= 0
    hoist_scale = (non_linearities == 'leaky_relu') and (clamp or static_nonneg)

    smem_scale = (scale / P) if hoist_scale else scale
    smem_scale = smem_scale.astype(jnp.float32).reshape(1)

    # Free reshape: split the leading (P*D) rows into per-projection planes.
    # No data movement, no transpose.
    w3 = weight.reshape(P, D, K)

    # Output-dim tile (bounds the double-buffered weight DMA block in VMEM).
    td = _pick_tile_d(D, K, weight_tile_bytes)

    # Batch tile ("parallel" axis; remainder tiles handled by pl.cdiv padding —
    # each output row depends only on its own input row, so padding is safe).
    tb = B if B <= batch_tile else batch_tile
    if tb != B and tb % 8 != 0:
        tb = B

    grid = (pl.cdiv(B, tb), D // td, P)

    kernel = functools.partial(
        _ranpac_kernel,
        inv_num_projection=1.0 / P,
        negative_slope=negative_slope,
        non_linearities=non_linearities,
        hoist_scale=hoist_scale)

    return pl.pallas_call(
        kernel,
        out_shape=jax.ShapeDtypeStruct((B, D), jnp.float32),
        grid_spec=pltpu.PrefetchScalarGridSpec(
            num_scalar_prefetch=0,
            grid=grid,
            in_specs=[
                pl.BlockSpec((tb, K), lambda b, d, p: (b, 0)),          # x
                pl.BlockSpec((1, td, K), lambda b, d, p: (p, d, 0)),    # weight
                pl.BlockSpec(memory_space=pltpu.MemorySpace.SMEM),      # scale
            ],
            out_specs=pl.BlockSpec((tb, td), lambda b, d, p: (b, d)),
            scratch_shapes=[pltpu.VMEM((tb, td), jnp.float32)],
        ),
        compiler_params=pltpu.CompilerParams(
            dimension_semantics=("parallel", "parallel", "arbitrary"),
            vmem_limit_bytes=48 * 1024 * 1024),
    )(x, w3, smem_scale)


def _reference_np(x, weight, lambda_param, *, num_projection, output_dim,
                  non_linearities='leaky_relu', negative_slope=0.2, clamp=True):
    """float64 numpy reference of the PyTorch forward (returns x_avg)."""
    x64 = np.asarray(x, np.float64)
    w64 = np.asarray(weight, np.float64)
    lam = float(np.asarray(lambda_param))
    if clamp:
        lam = float(np.clip(lam, 0.0005, 0.5))
    y = x64 @ w64.T * lam * math.sqrt(x64.shape[1])
    if non_linearities == 'leaky_relu':
        y = np.where(y >= 0, y, negative_slope * y)
    elif non_linearities == 'sigmoid':
        y = 1.0 / (1.0 + np.exp(-y))
    elif non_linearities == 'tanh':
        y = np.tanh(y)
    elif non_linearities == 'exp':
        y = np.exp(y)
    y = y.reshape(y.shape[0], num_projection, output_dim)
    return y.mean(axis=1)


if __name__ == "__main__":
    root = jax.random.PRNGKey(0)

    # --- Test 1: module-consistent toy shapes (single D tile), hoisted scale,
    # learnable-lambda branch (clamp=True).
    B, K, D, P = 8, 32, 16, 2
    k_x, k_w = jax.random.split(jax.random.fold_in(root, 1))
    x = jax.random.normal(k_x, (B, K), dtype=jnp.float32)
    w = jax.random.normal(k_w, (P * D, K), dtype=jnp.float32)
    lam = jnp.asarray(0.1, dtype=jnp.float32)
    out = jax.block_until_ready(
        ranpac_forward(x, w, lam, num_projection=P, output_dim=D,
                       negative_slope=0.2, clamp=True))
    ref = _reference_np(x, w, lam, num_projection=P, output_dim=D,
                        negative_slope=0.2, clamp=True)
    np.testing.assert_allclose(np.asarray(out), ref, rtol=1e-4, atol=1e-4)

    # --- Test 2: multi-projection reduction axis (P=3) AND output-dim tiling
    # (td=128 < D=256 forced via a small weight-block budget), hoisted scale.
    B, K, D, P = 16, 128, 256, 3
    k_x, k_w = jax.random.split(jax.random.fold_in(root, 2))
    x = jax.random.normal(k_x, (B, K), dtype=jnp.float32)
    w = jax.random.normal(k_w, (P * D, K), dtype=jnp.float32)
    lam = jnp.asarray(0.1, dtype=jnp.float32)
    out = jax.block_until_ready(
        ranpac_forward(x, w, lam, num_projection=P, output_dim=D,
                       negative_slope=0.2, clamp=True,
                       weight_tile_bytes=128 * 128 * 4))
    ref = _reference_np(x, w, lam, num_projection=P, output_dim=D,
                        negative_slope=0.2, clamp=True)
    np.testing.assert_allclose(np.asarray(out), ref, rtol=1e-4, atol=1e-4)

    # --- Test 3: fixed-lambda branch (clamp=False) with tanh -> pre-activation
    # scale path, 2 projections.
    B, K, D, P = 8, 64, 32, 2
    k_x, k_w = jax.random.split(jax.random.fold_in(root, 3))
    x = jax.random.normal(k_x, (B, K), dtype=jnp.float32)
    w = jax.random.normal(k_w, (P * D, K), dtype=jnp.float32)
    out = jax.block_until_ready(
        ranpac_forward(x, w, 0.05, num_projection=P, output_dim=D,
                       non_linearities='tanh', clamp=False))
    ref = _reference_np(x, w, 0.05, num_projection=P, output_dim=D,
                        non_linearities='tanh', clamp=False)
    np.testing.assert_allclose(np.asarray(out), ref, rtol=1e-4, atol=1e-4)

    print("KERNEL_OK")
</pallas_src>

<mosaic_0001>
module attributes {stable_mosaic.version = 11 : i64} {
  func.func @_ranpac_kernel(%arg0: i32, %arg1: i32, %arg2: i32, %arg3: memref<8x32xf32, #tpu.memory_space<vmem>>, %arg4: memref<1x16x32xf32, #tpu.memory_space<vmem>>, %arg5: memref<1xf32, #tpu.memory_space<smem>>, %arg6: memref<8x16xf32, #tpu.memory_space<vmem>>, %arg7: memref<8x16xf32, #tpu.memory_space<vmem>>) attributes {dimension_semantics = [#tpu.dimension_semantics<parallel>, #tpu.dimension_semantics<parallel>, #tpu.dimension_semantics<arbitrary>], iteration_bounds = array<i64: 1, 1, 2>, scalar_prefetch = 0 : i64, scratch_operands = 1 : i64, tpu.core_type = #tpu.core_type<tc>, window_params = [{transform_indices = @transform_0, window_bounds = array<i64: 8, 32>}, {transform_indices = @transform_1, window_bounds = array<i64: 1, 16, 32>}, {transform_indices = @transform_2, window_bounds = array<i64: 1>}, {transform_indices = @transform_3, window_bounds = array<i64: 8, 16>}]} {
    %c0_i32 = arith.constant 0 : i32
    %0 = arith.cmpi eq, %arg2, %c0_i32 : i32
    %1 = arith.extui %0 : i1 to i32
    %c0_i32_0 = arith.constant 0 : i32
    %2 = arith.cmpi ne, %1, %c0_i32_0 : i32
    scf.if %2 {
      %cst_11 = arith.constant 0.000000e+00 : f32
      %16 = vector.broadcast %cst_11 : f32 to vector<8x16xf32>
      %c0_12 = arith.constant 0 : index
      %c0_13 = arith.constant 0 : index
      %17 = vector.load %arg7[%c0_12, %c0_13] : memref<8x16xf32, #tpu.memory_space<vmem>>, vector<8x16xf32>
      tpu.vector_store %arg7[%c0_12, %c0_13], %16 {strides = array<i32>} : memref<8x16xf32, #tpu.memory_space<vmem>>, vector<8x16xf32>,
    } else {
    }
    %c0 = arith.constant 0 : index
    %c0_1 = arith.constant 0 : index
    %3 = vector.load %arg3[%c0, %c0_1] : memref<8x32xf32, #tpu.memory_space<vmem>>, vector<8x32xf32>
    %c0_2 = arith.constant 0 : index
    %c0_3 = arith.constant 0 : index
    %c0_4 = arith.constant 0 : index
    %4 = vector.load %arg4[%c0_2, %c0_3, %c0_4] : memref<1x16x32xf32, #tpu.memory_space<vmem>>, vector<1x16x32xf32>
    %5 = vector.shape_cast %4 : vector<1x16x32xf32> to vector<16x32xf32>
    %cst = arith.constant dense<0.000000e+00> : vector<8x16xf32>
    %6 = tpu.matmul %3, %5, %cst {dimension_numbers = #tpu.dot_dimension_numbers<[1], [1], [0], [0], [0, 0, 1, 0], [], []>} : vector<8x32xf32>, vector<16x32xf32>, vector<8x16xf32> -> vector<8x16xf32>
    %cst_5 = arith.constant 2.000000e-01 : f32
    %7 = vector.broadcast %cst_5 : f32 to vector<8x16xf32>
    %8 = arith.mulf %7, %6 : vector<8x16xf32>
    %9 = arith.maximumf %6, %8 : vector<8x16xf32>
    %c0_6 = arith.constant 0 : index
    %c0_7 = arith.constant 0 : index
    %10 = vector.load %arg7[%c0_6, %c0_7] : memref<8x16xf32, #tpu.memory_space<vmem>>, vector<8x16xf32>
    %11 = arith.addf %10, %9 : vector<8x16xf32>
    %c0_8 = arith.constant 0 : index
    %c0_9 = arith.constant 0 : index
    %12 = vector.load %arg7[%c0_8, %c0_9] : memref<8x16xf32, #tpu.memory_space<vmem>>, vector<8x16xf32>
    tpu.vector_store %arg7[%c0_8, %c0_9], %11 {strides = array<i32>} : memref<8x16xf32, #tpu.memory_space<vmem>>, vector<8x16xf32>,
    %c1_i32 = arith.constant 1 : i32
    %13 = arith.cmpi eq, %arg2, %c1_i32 : i32
    %14 = arith.extui %13 : i1 to i32
    %c0_i32_10 = arith.constant 0 : i32
    %15 = arith.cmpi ne, %14, %c0_i32_10 : i32
    scf.if %15 {
      %c0_11 = arith.constant 0 : index
      %c0_12 = arith.constant 0 : index
      %16 = vector.load %arg7[%c0_11, %c0_12] : memref<8x16xf32, #tpu.memory_space<vmem>>, vector<8x16xf32>
      %c0_13 = arith.constant 0 : index
      %17 = memref.load %arg5[%c0_13] : memref<1xf32, #tpu.memory_space<smem>>
      %18 = vector.broadcast %17 : f32 to vector<8x16xf32>
      %19 = arith.mulf %16, %18 : vector<8x16xf32>
      %c0_14 = arith.constant 0 : index
      %c0_15 = arith.constant 0 : index
      %20 = vector.load %arg6[%c0_14, %c0_15] : memref<8x16xf32, #tpu.memory_space<vmem>>, vector<8x16xf32>
      tpu.vector_store %arg6[%c0_14, %c0_15], %19 {strides = array<i32>} : memref<8x16xf32, #tpu.memory_space<vmem>>, vector<8x16xf32>,
    } else {
    }
    return
  }
  func.func @transform_0(%arg0: i32, %arg1: i32, %arg2: i32) -> (i32, i32) {
    %c0_i32 = arith.constant 0 : i32
    %c0_i32_0 = arith.constant 0 : i32
    return %arg0, %c0_i32 : i32, i32
  }
  func.func @transform_1(%arg0: i32, %arg1: i32, %arg2: i32) -> (i32, i32, i32) {
    %c0_i32 = arith.constant 0 : i32
    %c0_i32_0 = arith.constant 0 : i32
    return %arg2, %arg1, %c0_i32 : i32, i32, i32
  }
  func.func @transform_2(%arg0: i32, %arg1: i32, %arg2: i32) -> i32 {
    %c0_i32 = arith.constant 0 : i32
    %c0_i32_0 = arith.constant 0 : i32
    return %c0_i32 : i32
  }
  func.func @transform_3(%arg0: i32, %arg1: i32, %arg2: i32) -> (i32, i32) {
    %c0_i32 = arith.constant 0 : i32
    return %arg0, %arg1 : i32, i32
  }
}

</mosaic_0001>

<bundles_post_ra>
// kernel: tpu_custom_call.1
= control target key start
LH: loop header
LB: loop body
LE: loop exit
PB: predicated region body
PF: predicated region fallthrough
CT: control target
= control target key end

     0   :  { %s911_s0 = inlined_call_operand.hbm [shape: f32[8,32], index: 0, kind: input, shape index: {}]   ;;  %s912_s1 = inlined_call_operand.hbm [shape: f32[2,16,32], index: 1, kind: input, shape index: {}]   ;;  %s913_s2 = inlined_call_operand.<no memory space> [shape: f32[1], index: 2, kind: input, shape index: {}]   ;;  %s914_s3 = inlined_call_operand.hbm [shape: f32[8,16], index: 3, kind: output, shape index: {}]  }
   0x1   :  { %8 = sst [smem:[#allocation3]] %s913_s2 }
   0x2   :  { %9 = vsyncpa [#allocation5], 0 }
   0x3   :  { %10 = vsyncpa [#allocation8], 0 }
   0x4   :  { %12 = vsyncpa [#allocation8 + $0x1], 0 }
   0x5   :  { %13 = vsyncpa [#allocation6], 0  ;;  %s714_s14 = smov 0   ;;  %s716_s15 = smov 0  }
   0x6   :  { %s718_s16 = smov 0   ;;  %s720_s17 = smov 0  }
   0x7   :  { %s722_s18 = smov 0   ;;  %s724_s19 = smov 0  }
   0x8 LB: > { %s425_s2 = sadd.s32 4294967295, %s680_s19   ;;  %s73_s20 = sadd.s32 1, %s668_s16  ;;  %s680_s19 = sphi %s724_s19, %s19_s19   ;;  %s676_s18 = sphi %s722_s18, %s935_s18   ;;  %s672_s17 = sphi %s720_s17, %s934_s17   ;;  %s668_s16 = sphi %s718_s16, %s933_s16   ;;  %s664_s15 = sphi %s716_s15, %s932_s15   ;;  %s660_s14 = sphi %s714_s14, %s931_s14  }
   0x9   : > { %p80_p0 = scmp.ne.s32.totalorder %s668_s16, %s664_s15  ;;  %p81_p1 = scmp.eq.s32.totalorder %s680_s19, 0 }
   0xa   : > { %p86_p2 = scmp.ne.s32.totalorder %s664_s15, %s660_s14  ;;  %p750_p3 = scmp.eq.s32.totalorder %s425_s2, 0 }
   0xb   : > { %p82_p4 = por %p81_p1, %p80_p0  ;;  %p426_p5 = scmp.ge.s32.totalorder %s680_s19, 1 }
   0xc   : > { %s920_s21 = scalar_select %p750_p3, 1, 0 }
   0xd   : > { %p757_p6 = por %p750_p3, %p86_p2  ;;  %p146_p7 = scmp.lt.s32.totalorder %s680_s19, 3 }
   0xe   : > { %s682_s24 = smov [#allocation4]   ;;  %p478_p10 = scmp.lt.s32.totalorder %s680_s19, 2 }
   0xf   : > { %s921_s22 = scalar_select %p757_p6, 1, 0 }
  0x10   : > { %p762_p8 = pnand %p426_p5, %p146_p7  ;;  %s161_s25 = sshll.u32 %s682_s24, 4  ;;  %s162_s25 = int_to_ptr.vmem [resolvable:$true] %s161_s25 }
  0x11   : > { %s175_s26 = sand.u32 1, %s668_s16   ;;  %p776_p12 = pnand %p478_p10, %p82_p4 }
  0x12   : > { %s922_s23 = scalar_select %p762_p8, 1, 0 }
  0x13   : > { %p469_p9 = pneg %p762_p8  ;;  %s538_s4 = scalar_lea.hbm %s911_s0, 128 }
  0x14   : > { %s924_s28 = scalar_select %p776_p12, 1, 0 }
  0x15   : > { %p772_p11 = pnand %p469_p9, %p750_p3  ;;  %p539_p13 = scmp.ne.s32.totalorder %s911_s0, %s538_s4 }
  0x16   : > { %p545_p5 = scmp.lt.u32.totalorder %s538_s4, %s911_s0 }
  0x17   : > { %p540_p0 = pneg %p772_p11 }
  0x19   : > { %p541_p1 = pnand %p540_p0, %p539_p13 }
  0x1b   : > { %p542_p2 = pneg %p541_p1 }
  0x1d   : > { %p547_p4 = pnand %p545_p5, %p542_p2 }
  0x1f   : > { %550 = shalt.err (!%p547_p4)
}
  0x20   : > { %s551_s9 = scalar_lea.vmem %s162_s25, 128  ;;  %p559_p6 = scmp.lt.s32.totalorder %s162_s25, %s162_s25 }
  0x21   : > { %p552_p7 = scmp.ne.s32.totalorder %s162_s25, %s551_s9  ;;  %p560_p3 = scmp.lt.s32.totalorder %s551_s9, %s551_s9 }
  0x23   : > { %p554_p9 = pnand %p552_p7, %p540_p0  ;;  %p561_p8 = por %p560_p3, %p559_p6 }
  0x25   : > { %p555_p10 = pneg %p554_p9 }
  0x27   : > { %p562_p12 = pnand %p561_p8, %p555_p10 }
  0x29   : > { %565 = shalt.err (!%p562_p12)
}
  0x2a   : > { %472 = dma.hbm_to_vmem [thread:$0]  (!%p772_p11), %s911_s0, 128, %s162_s25, [#allocation5]  }
  0x2b   : > { %s31_s12 = sadd.s32 1, %s676_s18  ;;  %s429_s13 = sshll.u32 %s175_s26, 4 }
  0x2c   : > { %p32_p13 = scmp.ge.s32.totalorder %s31_s12, 2  ;;  %s444_s14 = sshll.u32 %s676_s18, 8 }
  0x2d   : > { %s179_s24 = scalar_lea.vmem [#allocation7], %s429_s13  ;;  %s805_s4 = scalar_lea.hbm %s912_s1, %s444_s14 }
  0x2e   : > { %s188_s29 = sshll.u32 %s179_s24, 4  ;;  %s937_s12 = smov (%p32_p13, %s31_s12), 0  ;;  %s807_s29 = int_to_ptr.vmem [resolvable:$true] %s188_s29 }
  0x2f   : > { %s68_s25 = ssub.s32 %s676_s18, %s937_s12  ;;  %s817_s6 = scalar_lea.sflag [#allocation8], %s175_s26 }
  0x30   : > { %p811_p3 = scmp.eq.s32.totalorder %s68_s25, 0  ;;  %s566_s7 = scalar_lea.hbm %s805_s4, 256 }
  0x31   : > { %p567_p6 = scmp.ne.s32.totalorder %s805_s4, %s566_s7  ;;  %p926_p8 = scmp.ne.s32.totalorder %s924_s28, 0 }
  0x32   : > { %s571_s10 = scalar_lea.hbm %s912_s1, 512  ;;  %p572_p1 = scmp.lt.u32.totalorder %s805_s4, %s912_s1 }
  0x33   : > { %p568_p11 = pneg %p926_p8  ;;  %p573_p2 = scmp.lt.u32.totalorder %s571_s10, %s566_s7 }
  0x34   : > { %p575_p4 = scmp.lt.u32.totalorder %s566_s7, %s805_s4 }
  0x35   : > { %p569_p12 = pnand %p568_p11, %p567_p6  ;;  %p574_p5 = por %p573_p2, %p572_p1 }
  0x37   : > { %p570_p0 = pneg %p569_p12  ;;  %p576_p7 = por %p575_p4, %p574_p5 }
  0x39   : > { %p577_p9 = pnand %p576_p7, %p570_p0 }
  0x3b   : > { %580 = shalt.err (!%p577_p9)
}
  0x3c   : > { %s581_s26 = scalar_lea.vmem %s807_s29, 256  ;;  %s683_s14 = smov [#allocation7]  }
  0x3d   : > { %p582_p10 = scmp.ne.s32.totalorder %s807_s29, %s581_s26  ;;  %s586_s24 = sshll.u32 %s683_s14, 4  ;;  %s587_s24 = int_to_ptr.vmem [resolvable:$false] %s586_s24 }
  0x3e   : > { %s588_s27 = scalar_lea.vmem %s587_s24, 512  ;;  %p589_p12 = scmp.lt.s32.totalorder %s807_s29, %s587_s24 }
  0x3f   : > { %p584_p13 = pnand %p582_p10, %p568_p11  ;;  %p590_p1 = scmp.lt.s32.totalorder %s588_s27, %s581_s26 }
  0x41   : > { %p585_p6 = pneg %p584_p13  ;;  %p591_p2 = por %p590_p1, %p589_p12 }
  0x43   : > { %p592_p5 = pnand %p591_p2, %p585_p6 }
  0x45   : > { %595 = shalt.err (!%p592_p5)
}
  0x46   : > { %s684_s30 = smov 128   ;;  %s685_s25 = smov 8  }
  0x47   : > { %476 = dma.hbm_to_vmem [thread:$0]  (!%p926_p8), %s805_s4, 256, %s807_s29, %s817_s6, %s684_s30, %s684_s30, %s685_s25  }
  0x48   : > { %s850_s7 = scalar_select %p811_p3, %s668_s16, %s73_s20  }
  0x49   : > { %p927_p11 = scmp.ne.s32.totalorder %s922_s23, 0 }
  0x4a   : > { %p928_p0 = scmp.ne.s32.totalorder (!%p927_p11), %s920_s21, 0 }
  0x4b   : > { %200 = sbr.rel (%p927_p11) target bundleno = 360 (0x168), region = 32 }
  0x52   : > { %647 = dma.done.wait (%p928_p0), [#allocation5], 128  }
  0x53   : > { %649 = vsyncadd (%p928_p0), [#allocation5], 4294967168  ;;  %s206_s8 = sand.u32 1, %s664_s15   ;;  %p929_p8 = scmp.ne.s32.totalorder %s921_s22, 0 }
  0x54   : > { %s434_s9 = sshll.u32 %s206_s8, 4  ;;  %s207_s10 = scalar_lea.sflag [#allocation8], %s206_s8 }
  0x55   : > { %s210_s28 = scalar_lea.vmem [#allocation7], %s434_s9 }
  0x56   : > { %651 = dma.done.wait (%p929_p8), %s207_s10, 256  }
  0x57   : > { %653 = vsyncadd (%p929_p8), %s207_s10, 4294967040  ;;  %p435_p3 = scmp.ne.s32.totalorder %s672_s17, 0 }
  0x58   : > { %vm233_vm0 = vcmask (!%p435_p3), 130048   ;;  %v686_v0 = vmov (!%p435_p3), 0.0  }
  0x59   : > { %232 = sbr.rel (%p435_p3) target bundleno = 96 (0x60), region = 44  ;;  %234 = vst.msk [vmem:[#allocation2] sm:$0xff] (!%p435_p3), %vm233_vm0, %v686_v0 }
  0x60 PF: > { %v236_v1 = vld [vmem:[%s210_s28] sm:$0xff]  ;;  %v237_v2 = vld [vmem:[%s210_s28 + $0x8] sm:$0xff]  ;;  %vm238_vm1 = vcmask 261120   ;;  %v687_v3 = vmov 0.0|0.0   ;;  %vm688_vm3 = vmmov 0   ;;  %v689_v5 = vmov 0.0  }
  0x61   : > { %455 = vmatprep.subr.bf16.mxu0 %v687_v3  ;;  %v456_v4 = vpack.c.bf16 %v237_v2, %v236_v1  ;;  %vm457_vm2 = vmpackc.low %vm238_vm1, %vm238_vm1  ;;  %452 = vmatprep.mubr.msk.f32.mxu0 %vm688_vm3, %v689_v5  ;;  %v235_v6 = vld [vmem:[#allocation4] sm:$0xff]  ;;  %v320_v10 = vld [vmem:[#allocation2] sm:$0xff]  ;;  %vm322_vm4 = vcmask 130048   ;;  %p439_p4 = scmp.ne.s32.totalorder %s672_s17, 1 }
  0x62   : > { %s329_s20 = sld [smem:[#allocation3]] (!%p439_p4) }
  0x63   : > { %458 = vmatpush3.bf16.xpose.msk.msra.mxu0 %vm457_vm2, %v456_v4 }
  0x68   : > { %v330_v14 = vstv (!%p439_p4), %s329_s20 }
  0x6a   : > { %453 = vmatmul.mubr.msk.f32.vlgmr.msra.gmra.mrb[0].mxu0 %vm238_vm1, %v235_v6 }
 0x13d   : > { %v314_v7 = vpop.f32.mrb[0].mxu0 }
 0x13e   : > { %v318_v8 = vmul.f32 0.2, %v314_v7  ;;  %v454_v9 = vpop.f32.mrb[1].mxu0  ;;  %327 = sbr.rel (%p439_p4) target bundleno = 335 (0x14f), region = 48 }
 0x140   : > { %v319_v11 = vmax.f32 %v314_v7, %v318_v8 }
 0x142   : > { %v321_v12 = vadd.f32 %v320_v10, %v319_v11 }
 0x144   : > { %323 = vst.msk [vmem:[#allocation2] sm:$0xff] %vm322_vm4, %v321_v12 }
 0x14b   : > { %v328_v13 = vld [vmem:[#allocation2] sm:$0xff] }
 0x14c   : > { %v331_v15 = vmul.f32 %v330_v14, %v328_v13 }
 0x14e   : > { %332 = vst.msk [vmem:[#allocation9] sm:$0xff] %vm322_vm4, %v331_v15 }
 0x14f PF: > { %p867_p7 = scmp.eq.s32.totalorder %s425_s2, 1  ;;  %s690_s22 = smov [#allocation9]  }
 0x150   : > { %s343_s23 = sshll.u32 %s690_s22, 4  ;;  %s344_s23 = int_to_ptr.vmem [resolvable:$true] %s343_s23 }
 0x151   : > { %s596_s29 = scalar_lea.vmem %s344_s23, 128  ;;  %p603_p6 = scmp.lt.s32.totalorder %s344_s23, %s344_s23 }
 0x152   : > { %p597_p9 = scmp.ne.s32.totalorder %s344_s23, %s596_s29  ;;  %p604_p12 = scmp.lt.s32.totalorder %s596_s29, %s596_s29 }
 0x154   : > { %p598_p10 = pnand %p597_p9, %p867_p7  ;;  %p605_p1 = por %p604_p12, %p603_p6 }
 0x156   : > { %p599_p13 = pneg %p598_p10 }
 0x158   : > { %p606_p2 = pnand %p605_p1, %p599_p13 }
 0x15a   : > { %609 = shalt.err (!%p606_p2)
}
 0x15b   : > { %s610_s2 = scalar_lea.hbm %s914_s3, 128 }
 0x15c   : > { %p611_p5 = scmp.ne.s32.totalorder %s914_s3, %s610_s2  ;;  %p616_p8 = scmp.lt.u32.totalorder %s610_s2, %s914_s3 }
 0x15e   : > { %p612_p11 = pnand %p611_p5, %p867_p7 }
 0x160   : > { %p613_p0 = pneg %p612_p11 }
 0x162   : > { %p618_p3 = pnand %p616_p8, %p613_p0 }
 0x164   : > { %621 = shalt.err (!%p618_p3)
}
 0x165   : > { %466 = dma.vmem_to_hbm [thread:$0]  (%p867_p7), %s344_s23, 128, %s914_s3, [#allocation6]  }
 0x166   : > { %655 = dma.done.wait (%p867_p7), [#allocation6], 128  }
 0x167   : > { %657 = vsyncadd (%p867_p7), [#allocation6], 4294967168 }
 0x168 PF: > { %s19_s19 = sadd.s32 1, %s680_s19   ;;  %s931_s14 = smov %s664_s15 }
 0x169   : > { %p16_p4 = scmp.ge.s32.totalorder %s19_s19, 4   ;;  %s932_s15 = smov %s668_s16 }
 0x16a   : > { %s933_s16 = smov %s850_s7  ;;  %s934_s17 = smov %s676_s18 }
 0x16b   : > { %s935_s18 = smov %s937_s12  ;;  %18 = sbr.rel (!%p16_p4) target bundleno = 8 (0x8), region = 84 }
 0x172   :  { %356 = vsyncpa [#allocation5], 1 }
 0x173   :  { %358 = vsyncpa [#allocation5 + $0x1], 1 }
 0x174   :  { %359 = vsyncpa [#allocation8], 1 }
 0x175   :  { %361 = vsyncpa [#allocation8 + $0x1], 1 }
 0x176   :  { %362 = vsyncpa [#allocation6], 1 }
 0x177   :  { %364 = vsyncpa [#allocation6 + $0x1], 1 }

</bundles_post_ra>
